<compile_context>
chip_gen: v5e
topology: v5e:2x2
jax: 0.10.0
libtpu: 0.0.40
codegen_flags: <defaults>
</compile_context>

<pallas_src>
import functools
import math

import jax
import jax.numpy as jnp
from jax.experimental import pallas as pl
from jax.experimental.pallas import tpu as pltpu


def _he_sigmoid_kernel(x_ref, o_ref, *, x_thresh, beta):
    # out = where(x > logit(threshold), x * beta, x)   -- pure VPU work.
    x = x_ref[...]
    # Compare in f32 so the threshold is not rounded to a low-precision dtype;
    # the cast is a cheap VPU op and this kernel is mem-bound anyway.
    pred = x.astype(jnp.float32) > jnp.float32(x_thresh)
    o_ref[...] = jnp.where(pred, x * jnp.asarray(beta, dtype=x.dtype), x)


def _sublane_pack(dtype):
    # rows per vreg sublane group: f32 -> 8, bf16 -> 16, int8/fp8 -> 32
    return {4: 8, 2: 16, 1: 32}.get(jnp.dtype(dtype).itemsize, 8)


def _pick_lane_width(total, max_lanes=8192):
    """Largest divisor of `total` that is a multiple of 128 and <= max_lanes."""
    best = None
    lanes = 128
    while lanes <= min(max_lanes, total):
        if total % lanes == 0:
            best = lanes
        lanes += 128
    return best


def _default_block_bytes():
    """Generation-aware per-buffer block size (bytes)."""
    vmem = None
    try:
        info = pltpu.get_tpu_info()
        vmem = getattr(info, "vmem_capacity_bytes", None)
    except Exception:
        vmem = None
    if vmem is None:
        vmem = 64 * 1024 * 1024  # conservative (v7x-sized) assumption
    # in + out, each double-buffered => ~4 live buffers of block_bytes.
    # 8 MiB blocks -> ~32 MiB pipelined VMEM: fits every generation
    # (v7x: 64 MiB physical; v5e/v6e: 128 MiB).  Drop to 4 MiB if the part
    # reports less VMEM than expected.
    if vmem >= 64 * 1024 * 1024:
        return 8 * 1024 * 1024
    return 4 * 1024 * 1024


def he_sigmoid_block(x, threshold, beta, *, block_bytes=None, donate_input=False):
    """HESigmoidBlock forward. x: (N, C, H, W) (any shape works). Same shape/dtype out."""
    orig_shape = x.shape
    dtype = x.dtype
    itemsize = jnp.dtype(dtype).itemsize
    total = math.prod(orig_shape)

    if block_bytes is None:
        block_bytes = _default_block_bytes()

    # Precompute the threshold in input space (monotonicity of sigmoid).
    # sigmoid(x) in (0, 1), so t <= 0 -> always scale, t >= 1 -> never scale.
    if threshold <= 0.0:
        x_thresh = -math.inf
    elif threshold >= 1.0:
        x_thresh = math.inf
    else:
        x_thresh = math.log(threshold / (1.0 - threshold))

    # ---- Lane-dense 2-D slab (elementwise => any rectangular view is valid) ----
    lanes = _pick_lane_width(total)
    padded_total = total
    if lanes is not None:
        rows, cols = total // lanes, lanes
        x2d = x.reshape(rows, cols)
    else:
        # No divisor of `total` is a multiple of 128: pad the flattened view so
        # every store is an unmasked, lane-dense vst, then slice afterwards.
        cols = 512
        padded_total = pl.cdiv(total, cols) * cols
        flat = jnp.pad(x.reshape(-1), (0, padded_total - total))
        rows = padded_total // cols
        x2d = flat.reshape(rows, cols)

    # ---- Byte-budgeted row tile, aligned to the dtype's sublane packing ----
    pack = _sublane_pack(dtype)
    budget_rows = max(pack, (block_bytes // (cols * itemsize)) // pack * pack)
    tr = min(rows, budget_rows)

    # Guarantee >= 2 grid steps when splittable, so both v7x TensorCores get
    # work under dimension_semantics=("parallel",).
    if pl.cdiv(rows, tr) < 2 and rows > pack:
        half = pl.cdiv(rows, 2)
        tr = max(pack, pl.cdiv(half, pack) * pack)

    grid = (pl.cdiv(rows, tr),)

    # VMEM budget: in + out, double-buffered => 4 live tiles; add headroom.
    tile_bytes = tr * cols * itemsize
    vmem_limit = min(4 * tile_bytes + (8 * 1024 * 1024), 48 * 1024 * 1024)

    kernel = functools.partial(_he_sigmoid_kernel, x_thresh=x_thresh, beta=beta)

    out2d = pl.pallas_call(
        kernel,
        out_shape=jax.ShapeDtypeStruct((rows, cols), dtype),
        grid=grid,
        in_specs=[pl.BlockSpec((tr, cols), lambda i: (i, 0))],
        out_specs=pl.BlockSpec((tr, cols), lambda i: (i, 0)),
        # Only alias when the caller actually donates x; an alias on a
        # non-donated input forces a defensive full-tensor copy (~2x traffic).
        input_output_aliases=({0: 0} if (donate_input and lanes is not None) else {}),
        cost_estimate=pl.CostEstimate(
            flops=3 * total,
            transcendentals=0,
            bytes_accessed=2 * padded_total * itemsize,
        ),
        compiler_params=pltpu.CompilerParams(
            dimension_semantics=("parallel",),
            vmem_limit_bytes=vmem_limit,
        ),
    )(x2d)

    if lanes is not None:
        return out2d.reshape(orig_shape)
    return out2d.reshape(-1)[:total].reshape(orig_shape)


def he_sigmoid_block_ref(x, threshold, beta):
    act = jax.nn.sigmoid(x)
    return jnp.where(act > threshold, x * beta, x)


if __name__ == "__main__":
    key = jax.random.PRNGKey(0)
    # Small shape consistent with (batch, channel, w, h).
    N, C, H, W = 2, 4, 16, 16
    x = jax.random.normal(key, (N, C, H, W), dtype=jnp.float32)

    threshold = 0.6
    beta = 0.5

    # Compute the reference first so nothing can interfere with it.
    ref = he_sigmoid_block_ref(x, threshold, beta)

    out = jax.block_until_ready(he_sigmoid_block(x, threshold, beta))

    assert out.shape == x.shape and out.dtype == x.dtype
    assert jnp.allclose(out, ref, atol=1e-6), "mismatch vs reference"

    # Also exercise the padded (non-power-of-two) fallback path, e.g. W=7/14.
    x2 = jax.random.normal(jax.random.PRNGKey(1), (2, 4, 14, 14), dtype=jnp.float32)
    ref2 = he_sigmoid_block_ref(x2, threshold, beta)
    out2 = jax.block_until_ready(he_sigmoid_block(x2, threshold, beta))
    assert out2.shape == x2.shape
    assert jnp.allclose(out2, ref2, atol=1e-6), "mismatch vs reference (padded path)"

    print("KERNEL_OK")
</pallas_src>

<mosaic_0001>
module attributes {stable_mosaic.version = 11 : i64} {
  func.func @_he_sigmoid_kernel(%arg0: i32, %arg1: memref<1x2048xf32, #tpu.memory_space<vmem>>, %arg2: memref<1x2048xf32, #tpu.memory_space<vmem>>) attributes {dimension_semantics = [#tpu.dimension_semantics<parallel>], iteration_bounds = array<i64: 1>, scalar_prefetch = 0 : i64, scratch_operands = 0 : i64, tpu.core_type = #tpu.core_type<tc>, window_params = [{transform_indices = @transform_0, window_bounds = array<i64: 1, 2048>}, {transform_indices = @transform_1, window_bounds = array<i64: 1, 2048>}]} {
    %c0 = arith.constant 0 : index
    %c0_0 = arith.constant 0 : index
    %0 = vector.load %arg1[%c0, %c0_0] : memref<1x2048xf32, #tpu.memory_space<vmem>>, vector<1x2048xf32>
    %cst = arith.constant 0.405465096 : f32
    %1 = vector.broadcast %cst : f32 to vector<1x2048xf32>
    %2 = arith.cmpf ogt, %0, %1 : vector<1x2048xf32>
    %cst_1 = arith.constant 5.000000e-01 : f32
    %3 = vector.broadcast %cst_1 : f32 to vector<1x2048xf32>
    %4 = arith.mulf %0, %3 : vector<1x2048xf32>
    %5 = arith.select %2, %4, %0 : vector<1x2048xi1>, vector<1x2048xf32>
    %c0_2 = arith.constant 0 : index
    %c0_3 = arith.constant 0 : index
    %6 = vector.load %arg2[%c0_2, %c0_3] : memref<1x2048xf32, #tpu.memory_space<vmem>>, vector<1x2048xf32>
    tpu.vector_store %arg2[%c0_2, %c0_3], %5 {strides = array<i32>} : memref<1x2048xf32, #tpu.memory_space<vmem>>, vector<1x2048xf32>,
    return
  }
  func.func @transform_0(%arg0: i32) -> (i32, i32) {
    %c0_i32 = arith.constant 0 : i32
    %c0_i32_0 = arith.constant 0 : i32
    return %arg0, %c0_i32 : i32, i32
  }
  func.func @transform_1(%arg0: i32) -> (i32, i32) {
    %c0_i32 = arith.constant 0 : i32
    %c0_i32_0 = arith.constant 0 : i32
    return %arg0, %c0_i32 : i32, i32
  }
}

</mosaic_0001>

<bundles_post_ra>
// kernel: tpu_custom_call.1
= control target key start
LH: loop header
LB: loop body
LE: loop exit
PB: predicated region body
PF: predicated region fallthrough
CT: control target
= control target key end

     0   :  { %6 = vsyncpa [#allocation3], 0  ;;  %s122_s0 = inlined_call_operand.hbm [shape: f32[1,2048], index: 0, kind: input, shape index: {}]   ;;  %s123_s1 = inlined_call_operand.hbm [shape: f32[1,2048], index: 1, kind: output, shape index: {}]  }
   0x1   :  { %7 = vsyncpa [#allocation4], 0  ;;  %s13_s8 = sshll.u32 %s122_s0, 4  ;;  %s104_s9 = smov [#allocation2]   ;;  %s14_s8 = int_to_ptr.hbm [resolvable:$true] %s13_s8 }
   0x2   :  { %s15_s10 = sshll.u32 %s104_s9, 4  ;;  %s16_s10 = int_to_ptr.vmem [resolvable:$true] %s15_s10 }
   0x3   :  { %18 = dma.hbm_to_vmem [thread:$0]  %s14_s8, 256, %s16_s10, [#allocation3]  }
   0x4   :  { %100 = dma.done.wait [#allocation3], 256  }
   0x5   :  { %101 = vsyncadd [#allocation3], 4294967040  ;;  %v23_v0 = vld [vmem:[#allocation2] sm:$0xff]  ;;  %v24_v1 = vld [vmem:[#allocation2 + $0x8] sm:$0xff]  ;;  %s105_s11 = smov [#allocation5]   ;;  %s40_s15 = sshll.u32 %s123_s1, 4  ;;  %s41_s15 = int_to_ptr.hbm [resolvable:$true] %s40_s15 }
   0x6   :  { %s38_s12 = sshll.u32 %s105_s11, 4  ;;  %vm25_vm0 = vcmp.gt.f32.partialorder %v23_v0, 0.4054651  ;;  %v27_v2 = vmul.f32 0.5, %v23_v0  ;;  %vm26_vm1 = vcmp.gt.f32.partialorder %v24_v1, 0.4054651  ;;  %s39_s12 = int_to_ptr.vmem [resolvable:$true] %s38_s12 }
   0x7   :  { %v28_v3 = vmul.f32 0.5, %v24_v1 }
   0x8   :  { %v29_v4 = vsel %vm25_vm0, %v27_v2, %v23_v0 }
   0x9   :  { %v30_v5 = vsel %vm26_vm1, %v28_v3, %v24_v1  ;;  %31 = vst [vmem:[#allocation5] sm:$0xff] %v29_v4 }
   0xa   :  { %32 = vst [vmem:[#allocation5 + $0x8] sm:$0xff] %v30_v5 }
   0xb   :  { %43 = dma.vmem_to_hbm [thread:$0]  %s39_s12, 256, %s41_s15, [#allocation4]  }
   0xc   :  { %102 = dma.done.wait [#allocation4], 256  }
   0xd   :  { %103 = vsyncadd [#allocation4], 4294967040 }
   0xe   :  { %48 = vsyncpa [#allocation3], 1 }
   0xf   :  { %49 = vsyncpa [#allocation4], 1 }

</bundles_post_ra>
